<compile_context>
chip_gen: v6e
topology: v6e:2x2x1
jax: 0.10.0
libtpu: 0.0.40
codegen_flags: <defaults>
</compile_context>

<pallas_src>
import functools

import jax
import jax.numpy as jnp
from jax import lax
from jax.experimental import pallas as pl
from jax.experimental.pallas import tpu as pltpu


def _round_up(x, m):
    return (x + m - 1) // m * m


# ----------------------------------------------------------------------------------
# 1. Conv stem: fused im2col matmul kernel (bf16 operands, f32 accumulation)
# ----------------------------------------------------------------------------------
def _stem_kernel(p_ref, w_ref, o_ref):
    # One MXU contraction per row tile: (TM, Kp) @ (Kp, 128), bf16 in / f32 out.
    o_ref[...] = jnp.dot(p_ref[...], w_ref[...], preferred_element_type=jnp.float32)


def conv_stem_pallas(x_nchw, w_oihw, *, row_tile=None):
    """Conv2d(Cin -> Cout, kernel 3x3, stride 2, padding 1, bias=False).

    x_nchw: (N, Cin, H, W); w_oihw: (Cout, Cin, 3, 3). Returns (N, Cout, H//2, W//2).
    """
    N, Cin, H, W = x_nchw.shape
    Cout = w_oihw.shape[0]
    assert H % 2 == 0 and W % 2 == 0
    Ho, Wo = H // 2, W // 2

    # NCHW -> NHWC; cast to bf16 BEFORE the im2col slab is materialized so the
    # wrapper-side HBM churn (transpose + pad + 9 slices + concat) is half-width.
    x = jnp.transpose(x_nchw, (0, 2, 3, 1)).astype(jnp.bfloat16)
    xp = jnp.pad(x, ((0, 0), (1, 1), (1, 1), (0, 0)))

    # im2col in the wrapper: stride-2 taps become contiguous channel groups, so the
    # kernel sees one big-K matmul instead of 9 tiny unaligned-sliced ones.
    taps = []
    for kh in range(3):
        for kw in range(3):
            taps.append(xp[:, kh:kh + 2 * Ho:2, kw:kw + 2 * Wo:2, :])  # (N, Ho, Wo, Cin)
    patches = jnp.concatenate(taps, axis=-1).reshape(N * Ho * Wo, 9 * Cin)

    # torch OIHW -> (kh, kw, Cin, Cout) -> (9*Cin, Cout); same tap/channel order as above.
    wk = jnp.transpose(w_oihw, (2, 3, 1, 0)).astype(jnp.bfloat16).reshape(9 * Cin, Cout)

    # Pad K to a lane-dense multiple of 128 and Cout 64 -> 128 so the output stores are
    # unmasked full-lane vst (largest single measured lever); whole batch is folded into
    # the row dim -> no per-sample grid steps.
    K = 9 * Cin
    Kp = _round_up(K, 128)
    Coutp = _round_up(Cout, 128)
    R = N * Ho * Wo
    if row_tile is None:
        # Mem-bound tiling: big tiles at realistic R (512 -> ~85% of HBM roofline),
        # but keep >= 2 row tiles so the "parallel" axis shards across two TensorCores.
        if R >= 1024:
            row_tile = 512
        elif R >= 512:
            row_tile = 256
        elif R >= 256:
            row_tile = 128
        else:
            row_tile = max(16, _round_up(max(R // 2, 1), 16))  # bf16 sublane packing
    Rp = _round_up(R, row_tile)
    patches = jnp.pad(patches, ((0, Rp - R), (0, Kp - K)))
    wk = jnp.pad(wk, ((0, Kp - K), (0, Coutp - Cout)))

    out = pl.pallas_call(
        _stem_kernel,
        out_shape=jax.ShapeDtypeStruct((Rp, Coutp), jnp.float32),
        grid=(Rp // row_tile,),
        in_specs=[
            pl.BlockSpec((row_tile, Kp), lambda i: (i, 0)),
            # Constant-index weight: single-buffer it (no re-DMA between steps anyway).
            pl.BlockSpec((Kp, Coutp), lambda i: (0, 0),
                         pipeline_mode=pl.Buffered(1)),
        ],
        out_specs=pl.BlockSpec((row_tile, Coutp), lambda i: (i, 0)),
        compiler_params=pltpu.CompilerParams(
            dimension_semantics=("parallel",)),
    )(patches, wk)

    out = out[:R, :Cout].reshape(N, Ho, Wo, Cout)
    # TODO(synk): if the (untranslated) EfficientNet trunk consumed NHWC directly, this
    # transpose back to NCHW could be dropped (saves a full extra pass over the output).
    return jnp.transpose(out, (0, 3, 1, 2))


# ----------------------------------------------------------------------------------
# 2. Fused head kernel: avg-pool (tiled reduction) + fc(2560->512->128) + two heads
# ----------------------------------------------------------------------------------
def _head_kernel(f_ref, w1_ref, b1_ref, w2_ref, b2_ref, w3_ref, b3_ref,
                 o_ref, acc_ref, *, inv_s):
    s = pl.program_id(1)

    @pl.when(s == 0)
    def _():
        acc_ref[...] = jnp.zeros_like(acc_ref)

    # adaptive_avg_pool2d(1): accumulate the spatial sum of this S tile in f32.
    # Channels stay lane-dense (2560 = 20 * 128); axis-0 sum is just St elementwise adds.
    acc_ref[...] += jnp.sum(f_ref[...].astype(jnp.float32), axis=0)

    @pl.when(s == pl.num_programs(1) - 1)
    def _():
        pooled = (acc_ref[...] * inv_s).astype(jnp.bfloat16)               # (Bt, 2560)

        h = jnp.dot(pooled, w1_ref[...], preferred_element_type=jnp.float32) + b1_ref[...]
        h = jnp.maximum(h, 0.0).astype(jnp.bfloat16)
        # Dropout(p=0.2): identity at inference.
        # TODO(synk): training-mode dropout (pltpu.prng_seed + prng_random_bits) not done.
        h = jnp.dot(h, w2_ref[...], preferred_element_type=jnp.float32) + b2_ref[...]
        h = jnp.maximum(h, 0.0).astype(jnp.bfloat16)

        # The two 128->1 heads fused into one (128, 2) matmul:
        #   column 0 = real/fake logit (no activation), column 1 = kinship (sigmoid).
        logits = jnp.dot(h, w3_ref[...], preferred_element_type=jnp.float32) + b3_ref[...]
        col = lax.broadcasted_iota(jnp.int32, logits.shape, 1)
        sig = 1.0 / (1.0 + jnp.exp(-logits))
        o_ref[...] = jnp.where(col == 1, sig, logits)


def discriminator_head_pallas(feats_nchw, w1, b1, w2, b2, w_rf, b_rf, w_k, b_k,
                              *, batch_tile=128, s_tile=8):
    """feats_nchw: (N, 2560, Hf, Wf); weights in torch Linear layout (out, in)."""
    N, C, Hf, Wf = feats_nchw.shape
    S = Hf * Wf

    Np = _round_up(max(N, 16), 16)        # bf16 sublane packing: batch multiple of 16
    Bt = min(Np, batch_tile)              # batch tile ("parallel": megacore-shardable)
    Np = _round_up(Np, Bt)
    St = min(S, s_tile)                   # spatial tile ("arbitrary": reduction axis)
    Sp = _round_up(S, St)

    # (N, C, Hf, Wf) -> (S, N, C): spatial leading (reduced across grid steps),
    # channels on lanes. Cast to bf16 before padding (halves HBM traffic).
    f = jnp.transpose(feats_nchw, (2, 3, 0, 1)).reshape(S, N, C).astype(jnp.bfloat16)
    f = jnp.pad(f, ((0, Sp - S), (0, Np - N), (0, 0)))

    # torch (out, in) -> (in, out); fuse the two heads into one (128, 2) matrix.
    w1k = jnp.transpose(w1).astype(jnp.bfloat16)                           # (2560, 512)
    w2k = jnp.transpose(w2).astype(jnp.bfloat16)                           # (512, 128)
    w3k = jnp.concatenate([jnp.transpose(w_rf), jnp.transpose(w_k)],
                          axis=1).astype(jnp.bfloat16)                     # (128, 2)
    b1k = b1.reshape(1, -1).astype(jnp.float32)
    b2k = b2.reshape(1, -1).astype(jnp.float32)
    b3k = jnp.concatenate([b_rf, b_k]).reshape(1, 2).astype(jnp.float32)

    D1, D2 = w1k.shape[1], w2k.shape[1]

    # Constant-index weight/bias blocks: single-buffer them to save VMEM.
    const = functools.partial(pl.BlockSpec, pipeline_mode=pl.Buffered(1))

    # VMEM budget derived from the actual block sizes (generation-independent),
    # instead of requesting the entire per-core VMEM.
    vmem_bytes = (
        2 * St * Bt * C * 2                     # feature tiles (bf16, double-buffered)
        + (C * D1 + D1 * D2 + D2 * 2) * 2       # weights (bf16, single-buffered)
        + (D1 + D2 + 2) * 4                     # biases (f32, single-buffered)
        + Bt * C * 4                            # pooled-sum accumulator scratch (f32)
        + 2 * Bt * 2 * 4                        # output tiles
    )
    vmem_limit = min(int(vmem_bytes * 3 // 2) + (2 << 20), 100 << 20)

    out = pl.pallas_call(
        functools.partial(_head_kernel, inv_s=1.0 / S),
        out_shape=jax.ShapeDtypeStruct((Np, 2), jnp.float32),
        grid_spec=pltpu.PrefetchScalarGridSpec(
            num_scalar_prefetch=0,
            grid=(Np // Bt, Sp // St),
            in_specs=[
                pl.BlockSpec((St, Bt, C), lambda b, s: (s, b, 0)),
                const((C, D1), lambda b, s: (0, 0)),
                const((1, D1), lambda b, s: (0, 0)),
                const((D1, D2), lambda b, s: (0, 0)),
                const((1, D2), lambda b, s: (0, 0)),
                const((D2, 2), lambda b, s: (0, 0)),
                const((1, 2), lambda b, s: (0, 0)),
            ],
            out_specs=pl.BlockSpec((Bt, 2), lambda b, s: (b, 0)),
            scratch_shapes=[pltpu.VMEM((Bt, C), jnp.float32)],
        ),
        compiler_params=pltpu.CompilerParams(
            dimension_semantics=("parallel", "arbitrary"),
            vmem_limit_bytes=vmem_limit),
    )(f, w1k, b1k, w2k, b2k, w3k, b3k)

    real_fake = out[:N, 0:1]
    kinship = out[:N, 1:2]
    return real_fake, kinship


# ----------------------------------------------------------------------------------
# Pure-JAX reference (sanity check)
# ----------------------------------------------------------------------------------
def discriminator_ref(combined, stem_w, trunk_feats, w1, b1, w2, b2, w_rf, b_rf, w_k, b_k):
    stem = lax.conv_general_dilated(
        combined, stem_w, window_strides=(2, 2), padding=((1, 1), (1, 1)),
        dimension_numbers=("NCHW", "OIHW", "NCHW"))
    pooled = jnp.mean(trunk_feats, axis=(2, 3))
    h = jnp.maximum(pooled @ w1.T + b1, 0.0)          # Dropout is identity in eval
    h = jnp.maximum(h @ w2.T + b2, 0.0)
    rf = h @ w_rf.T + b_rf
    kin = jax.nn.sigmoid(h @ w_k.T + b_k)
    return stem, rf, kin


if __name__ == "__main__":
    N, H, W = 2, 16, 16
    Cstem = 64
    Cfeat, Hf, Wf = 2560, 4, 4

    key = jax.random.PRNGKey(0)
    ks = jax.random.split(key, 11)

    father = jax.random.normal(ks[0], (N, 3, H, W), jnp.float32)
    mother = jax.random.normal(ks[1], (N, 3, H, W), jnp.float32)
    child = jax.random.normal(ks[2], (N, 3, H, W), jnp.float32)

    stem_w = jax.random.normal(ks[3], (Cstem, 9, 3, 3), jnp.float32) * 0.1

    # TODO(synk): synthetic stand-in for the untranslated EfficientNet-b7 trunk output.
    trunk_feats = jax.random.normal(ks[4], (N, Cfeat, Hf, Wf), jnp.float32)

    w1 = jax.random.normal(ks[5], (512, 2560), jnp.float32) * 0.02
    b1 = jax.random.normal(ks[6], (512,), jnp.float32) * 0.1
    w2 = jax.random.normal(ks[7], (128, 512), jnp.float32) * 0.05
    b2 = jax.random.normal(ks[8], (128,), jnp.float32) * 0.1
    w_rf = jax.random.normal(ks[9], (1, 128), jnp.float32) * 0.1
    b_rf = jnp.zeros((1,), jnp.float32)
    w_k = jax.random.normal(ks[10], (1, 128), jnp.float32) * 0.1
    b_k = jnp.zeros((1,), jnp.float32)

    # ---- Pallas forward ----
    combined = jnp.concatenate([father, mother, child], axis=1)   # torch.cat(dim=1)
    stem_out = conv_stem_pallas(combined, stem_w)
    real_fake, kinship = discriminator_head_pallas(
        trunk_feats, w1, b1, w2, b2, w_rf, b_rf, w_k, b_k)
    jax.block_until_ready((stem_out, real_fake, kinship))

    # ---- reference ----
    stem_ref, rf_ref, kin_ref = discriminator_ref(
        combined, stem_w, trunk_feats, w1, b1, w2, b2, w_rf, b_rf, w_k, b_k)

    assert stem_out.shape == (N, Cstem, H // 2, W // 2)
    assert real_fake.shape == (N, 1) and kinship.shape == (N, 1)
    # loose tolerance: operands are bf16 (MXU-native), accumulation is f32
    assert jnp.max(jnp.abs(stem_out - stem_ref)) < 5e-2
    assert jnp.max(jnp.abs(real_fake - rf_ref)) < 5e-2
    assert jnp.max(jnp.abs(kinship - kin_ref)) < 5e-2

    print("KERNEL_OK")
</pallas_src>

<mosaic_0001>
module attributes {stable_mosaic.version = 11 : i64} {
  func.func @_stem_kernel(%arg0: i32, %arg1: memref<64x128xbf16, #tpu.memory_space<vmem>>, %arg2: memref<128x128xbf16, #tpu.memory_space<vmem>>, %arg3: memref<64x128xf32, #tpu.memory_space<vmem>>) attributes {dimension_semantics = [#tpu.dimension_semantics<parallel>], iteration_bounds = array<i64: 2>, scalar_prefetch = 0 : i64, scratch_operands = 0 : i64, tpu.core_type = #tpu.core_type<tc>, window_params = [{transform_indices = @transform_0, window_bounds = array<i64: 64, 128>}, {pipeline_mode = #tpu.pipeline_mode<synchronous>, transform_indices = @transform_1, window_bounds = array<i64: 128, 128>}, {transform_indices = @transform_2, window_bounds = array<i64: 64, 128>}]} {
    %c0 = arith.constant 0 : index
    %c0_0 = arith.constant 0 : index
    %0 = vector.load %arg1[%c0, %c0_0] : memref<64x128xbf16, #tpu.memory_space<vmem>>, vector<64x128xbf16>
    %c0_1 = arith.constant 0 : index
    %c0_2 = arith.constant 0 : index
    %1 = vector.load %arg2[%c0_1, %c0_2] : memref<128x128xbf16, #tpu.memory_space<vmem>>, vector<128x128xbf16>
    %cst = arith.constant dense<0.000000e+00> : vector<64x128xf32>
    %2 = tpu.matmul %0, %1, %cst {dimension_numbers = #tpu.dot_dimension_numbers<[1], [0], [0], [1], [0, 0, 1, 1], [], []>} : vector<64x128xbf16>, vector<128x128xbf16>, vector<64x128xf32> -> vector<64x128xf32>
    %c0_3 = arith.constant 0 : index
    %c0_4 = arith.constant 0 : index
    %3 = vector.load %arg3[%c0_3, %c0_4] : memref<64x128xf32, #tpu.memory_space<vmem>>, vector<64x128xf32>
    tpu.vector_store %arg3[%c0_3, %c0_4], %2 {strides = array<i32>} : memref<64x128xf32, #tpu.memory_space<vmem>>, vector<64x128xf32>,
    return
  }
  func.func @transform_0(%arg0: i32) -> (i32, i32) {
    %c0_i32 = arith.constant 0 : i32
    %c0_i32_0 = arith.constant 0 : i32
    return %arg0, %c0_i32 : i32, i32
  }
  func.func @transform_1(%arg0: i32) -> (i32, i32) {
    %c0_i32 = arith.constant 0 : i32
    %c0_i32_0 = arith.constant 0 : i32
    %c0_i32_1 = arith.constant 0 : i32
    return %c0_i32, %c0_i32_0 : i32, i32
  }
  func.func @transform_2(%arg0: i32) -> (i32, i32) {
    %c0_i32 = arith.constant 0 : i32
    %c0_i32_0 = arith.constant 0 : i32
    return %arg0, %c0_i32 : i32, i32
  }
}

</mosaic_0001>

<bundles_post_ra>
// kernel: tpu_custom_call.1
= control target key start
LH: loop header
LB: loop body
LE: loop exit
PB: predicated region body
PF: predicated region fallthrough
CT: control target
= control target key end

     0   :  { %7 = vsyncpa [#allocation3], 0  ;;  %s937_s0 = inlined_call_operand.hbm [shape: bf16[128,128], index: 0, kind: input, shape index: {}]   ;;  %s938_s1 = inlined_call_operand.hbm [shape: bf16[128,128], index: 1, kind: input, shape index: {}]   ;;  %s939_s2 = inlined_call_operand.hbm [shape: f32[128,128], index: 2, kind: output, shape index: {}]  }
   0x1   :  { %9 = vsyncpa [#allocation3 + $0x1], 0 }
   0x2   :  { %10 = vsyncpa [#allocation6], 0 }
   0x3   :  { %11 = vsyncpa [#allocation4], 0 }
   0x4   :  { %13 = vsyncpa [#allocation4 + $0x1], 0  ;;  %s747_s9 = smov 0   ;;  %s749_s10 = smov 0  }
   0x5   :  { %s751_s11 = smov 0   ;;  %s753_s12 = smov 0  }
   0x6 LB: > { %s768_s13 = sadd.s32 4294967295, %s723_s12   ;;  %s446_s14 = sadd.s32 4294967294, %s723_s12   ;;  %s723_s12 = sphi %s753_s12, %s961_s12   ;;  %s719_s11 = sphi %s751_s11, %s960_s11   ;;  %s715_s10 = sphi %s749_s10, %s959_s10   ;;  %s711_s9 = sphi %s747_s9, %s958_s9  }
   0x7   : > { %p39_p0 = scmp.ne.s32.totalorder %s715_s10, %s711_s9  ;;  %p940_p1 = scmp.eq.s32.totalorder %s768_s13, 0 }
   0x8   : > { %p90_p3 = scmp.eq.s32.totalorder %s446_s14, 1  ;;  %p447_p5 = scmp.ge.s32.totalorder %s723_s12, 1 }
   0x9   : > { %p777_p4 = por %p940_p1, %p39_p0  ;;  %p97_p7 = scmp.lt.s32.totalorder %s723_s12, 3 }
   0xa   : > { %p782_p6 = por %p90_p3, %p39_p0  ;;  %s725_s18 = smov [#allocation5]  }
   0xb   : > { %s944_s15 = scalar_select %p777_p4, 1, 0 }
   0xc   : > { %s945_s16 = scalar_select %p782_p6, 1, 0 }
   0xd   : > { %p787_p8 = pnand %p447_p5, %p97_p7  ;;  %s109_s19 = sshll.u32 %s725_s18, 4  ;;  %s110_s19 = int_to_ptr.vmem [resolvable:$true] %s109_s19 }
   0xe   : > { %s801_s21 = sadd.s32 1, %s723_s12   ;;  %s26_s22 = sadd.s32 1, %s719_s11 }
   0xf   : > { %s946_s17 = scalar_select %p787_p8, 1, 0 }
  0x10   : > { %p536_p9 = pneg %p787_p8  ;;  %s23_s23 = ssub.s32 %s723_s12, %s801_s21 }
  0x11   : > { %s612_s24 = scalar_lea.vmem %s110_s19, 1024  ;;  %p620_p5 = scmp.lt.s32.totalorder %s110_s19, %s110_s19 }
  0x12   : > { %p796_p11 = pnand %p536_p9, %p940_p1  ;;  %p613_p13 = scmp.ne.s32.totalorder %s110_s19, %s612_s24 }
  0x13   : > { %p621_p7 = scmp.lt.s32.totalorder %s612_s24, %s612_s24 }
  0x14   : > { %p603_p12 = pneg %p796_p11 }
  0x15   : > { %p622_p10 = por %p621_p7, %p620_p5 }
  0x16   : > { %p615_p0 = pnand %p613_p13, %p603_p12 }
  0x18   : > { %p616_p3 = pneg %p615_p0 }
  0x1a   : > { %p623_p2 = pnand %p622_p10, %p616_p3 }
  0x1c   : > { %626 = shalt.err (!%p623_p2)
}
  0x1d   : > { %s726_s25 = smov 64   ;;  %s727_s26 = smov 4  }
  0x1e   : > { %539 = dma.hbm_to_vmem [thread:$0]  (!%p796_p11), %s938_s1, 1024, %s110_s19, [#allocation6], %s726_s25, %s726_s25, %s727_s26  }
  0x1f   : > { %p24_p2 = scmp.eq.s32.totalorder %s23_s23, 0  ;;  %p33_p9 = scmp.ne.s32.totalorder %s719_s11, %s715_s10 }
  0x20   : > { %p34_p10 = scmp.eq.s32.totalorder %s723_s12, 0  ;;  %p549_p12 = scmp.lt.s32.totalorder %s723_s12, 2 }
  0x21   : > { %s821_s29 = scalar_select %p24_p2, %s719_s11, %s26_s22  }
  0x22   : > { %p35_p13 = por %p34_p10, %p33_p9  ;;  %p948_p0 = scmp.eq.s32.totalorder %s768_s13, 1 }
  0x23   : > { %s123_s3 = sand.u32 1, %s719_s11   ;;  %s474_s4 = sshll.u32 %s723_s12, 9 }
  0x24   : > { %p825_p3 = por %p948_p0, %p33_p9  ;;  %s450_s5 = sshll.u32 %s123_s3, 5 }
  0x25   : > { %s834_s8 = scalar_lea.hbm %s937_s0, %s474_s4  ;;  %s127_s14 = scalar_lea.vmem [#allocation2], %s450_s5 }
  0x26   : > { %s949_s30 = scalar_select %p825_p3, 1, 0 }
  0x27   : > { %s134_s18 = sshll.u32 %s127_s14, 4  ;;  %p836_p11 = pnand %p549_p12, %p35_p13  ;;  %s840_s18 = int_to_ptr.vmem [resolvable:$true] %s134_s18 }
  0x28   : > { %s842_s20 = scalar_lea.sflag [#allocation3], %s123_s3  ;;  %s627_s22 = scalar_lea.hbm %s834_s8, 512 }
  0x29   : > { %p628_p5 = scmp.ne.s32.totalorder %s834_s8, %s627_s22  ;;  %p629_p7 = pneg %p836_p11 }
  0x2a   : > { %s632_s27 = scalar_lea.hbm %s937_s0, 1024  ;;  %p633_p10 = scmp.lt.s32.totalorder %s834_s8, %s937_s0 }
  0x2b   : > { %p630_p2 = pnand %p629_p7, %p628_p5  ;;  %p634_p12 = scmp.lt.s32.totalorder %s632_s27, %s627_s22 }
  0x2d   : > { %p631_p9 = pneg %p630_p2  ;;  %p635_p13 = por %p634_p12, %p633_p10 }
  0x2f   : > { %p636_p0 = pnand %p635_p13, %p631_p9 }
  0x31   : > { %639 = shalt.err (!%p636_p0)
}
  0x32   : > { %s640_s3 = scalar_lea.vmem %s840_s18, 512  ;;  %s728_s5 = smov [#allocation2]  }
  0x33   : > { %p641_p1 = scmp.ne.s32.totalorder %s840_s18, %s640_s3  ;;  %s645_s6 = sshll.u32 %s728_s5, 4  ;;  %s646_s6 = int_to_ptr.vmem [resolvable:$false] %s645_s6 }
  0x34   : > { %s647_s7 = scalar_lea.vmem %s646_s6, 1024  ;;  %p648_p2 = scmp.lt.s32.totalorder %s840_s18, %s646_s6 }
  0x35   : > { %p643_p6 = pnand %p641_p1, %p629_p7  ;;  %p649_p3 = scmp.lt.s32.totalorder %s647_s7, %s640_s3 }
  0x37   : > { %p644_p5 = pneg %p643_p6  ;;  %p650_p4 = por %p649_p3, %p648_p2 }
  0x39   : > { %p651_p8 = pnand %p650_p4, %p644_p5 }
  0x3b   : > { %654 = shalt.err (!%p651_p8)
}
  0x3c   : > { %543 = dma.hbm_to_vmem [thread:$0]  (!%p836_p11), %s834_s8, 512, %s840_s18, %s842_s20, %s726_s25, %s726_s25, %s727_s26  }
  0x3d   : > { %p951_p1 = scmp.ne.s32.totalorder %s946_s17, 0 }
  0x3e   : > { %s869_s14 = sand.u32 (!%p951_p1), 1, %s715_s10   ;;  %p952_p4 = scmp.ne.s32.totalorder (!%p951_p1), %s944_s15, 0 }
  0x3f   : > { %146 = sbr.rel (%p951_p1) target bundleno = 318 (0x13e), region = 28  ;;  %s454_s22 = sshll.u32 (!%p951_p1), %s869_s14, 5 }
  0x40   : > { %s149_s23 = scalar_lea.sflag (!%p951_p1), [#allocation3], %s869_s14  ;;  %s873_s24 = scalar_lea.vmem (!%p951_p1), [#allocation2], %s454_s22 }
  0x44   : > { %698 = dma.done.wait (%p952_p4), %s149_s23, 512  }
  0x45   : > { %700 = vsyncadd (%p952_p4), %s149_s23, 4294966784  ;;  %p953_p6 = scmp.eq.s32.totalorder %s768_s13, 0 }
  0x47   : > { %702 = dma.done.wait (%p953_p6), [#allocation6], 1024   ;;  %p954_p8 = pmov %p953_p6 }
  0x48   : > { %v589_v0 = vld [vmem:[#allocation5 + $0x38] sm:$0xff]   ;;  %v590_v1 = vld [vmem:[#allocation5 + $0x30] sm:$0xff]   ;;  %v591_v2 = vld [vmem:[#allocation5 + $0x28] sm:$0xff]   ;;  %s456_s15 = sshll.u32 %s869_s14, 6  ;;  %s475_s26 = sshll.u32 %s768_s13, 10 }
  0x49   : > { %704 = vsyncadd (%p954_p8), [#allocation6], 4294966272  ;;  %488 = vmatprep.subr.bf16.mxu0 %v589_v0  ;;  %512 = vmatprep.subr.bf16.mxu1 %v589_v0  ;;  %v592_v3 = vld [vmem:[#allocation5 + $0x20] sm:$0xff]   ;;  %v598_v5 = vld [vmem:[%s873_s24 + $0x10] sm:$0xff]   ;;  %s176_s17 = scalar_lea.vmem [#allocation7], %s456_s15  ;;  %s894_s19 = scalar_lea.hbm %s939_s2, %s475_s26 }
  0x4a   : > { %489 = vmatpush3.bf16.msra.mxu0 %v589_v0  ;;  %520 = vmatpush3.bf16.msra.mxu1 %v589_v0  ;;  %v597_v4 = vld [vmem:[%s873_s24] sm:$0xff]   ;;  %v593_v6 = vld [vmem:[#allocation5 + $0x18] sm:$0xff]   ;;  %v594_v7 = vld [vmem:[#allocation5 + $0x10] sm:$0xff]   ;;  %s363_s25 = sshll.u32 %s176_s17, 4  ;;  %s350_s13 = scalar_lea.sflag [#allocation4], %s869_s14  ;;  %s889_s25 = int_to_ptr.vmem [resolvable:$true] %s363_s25 }
  0x4b   : > { %490 = vmatprep.subr.bf16.mxu0 %v590_v1  ;;  %513 = vmatprep.subr.bf16.mxu1 %v590_v1  ;;  %v595_v8 = vld [vmem:[#allocation5 + $0x8] sm:$0xff]   ;;  %v596_v9 = vld [vmem:[#allocation5] sm:$0xff]   ;;  %v600_v11 = vld [vmem:[%s873_s24 + $0x18] sm:$0xff]   ;;  %s655_s20 = scalar_lea.vmem %s889_s25, 1024  ;;  %p955_p11 = scmp.ne.s32.totalorder %s949_s30, 0 }
  0x4c   : > { %504 = vmatprep.mubr.bf16.mxu0 %v597_v4  ;;  %508 = vmatprep.mubr.bf16.mxu1 %v598_v5  ;;  %v599_v10 = vld [vmem:[%s873_s24 + $0x8] sm:$0xff]   ;;  %p656_p3 = scmp.ne.s32.totalorder %s889_s25, %s655_s20  ;;  %s729_s27 = smov [#allocation7]  }
  0x4d   : > { %s659_s28 = sshll.u32 %s729_s27, 4  ;;  %s660_s28 = int_to_ptr.vmem [resolvable:$false] %s659_s28 }
  0x4e   : > { %491 = vmatpush3.bf16.msra.mxu0 %v590_v1  ;;  %521 = vmatpush3.bf16.msra.mxu1 %v590_v1  ;;  %p657_p7 = pnand %p656_p3, %p955_p11  ;;  %s661_s4 = scalar_lea.vmem %s660_s28, 2048 }
  0x4f   : > { %492 = vmatprep.subr.bf16.mxu0 %v591_v2  ;;  %514 = vmatprep.subr.bf16.mxu1 %v591_v2  ;;  %p662_p10 = scmp.lt.s32.totalorder %s889_s25, %s660_s28  ;;  %p663_p12 = scmp.lt.s32.totalorder %s661_s4, %s655_s20 }
  0x50   : > { %p658_p9 = pneg %p657_p7 }
  0x51   : > { %p664_p13 = por %p663_p12, %p662_p10 }
  0x52   : > { %493 = vmatpush3.bf16.msra.mxu0 %v591_v2  ;;  %522 = vmatpush3.bf16.msra.mxu1 %v591_v2 }
  0x53   : > { %494 = vmatprep.subr.bf16.mxu0 %v592_v3  ;;  %515 = vmatprep.subr.bf16.mxu1 %v592_v3  ;;  %p665_p0 = pnand %p664_p13, %p658_p9 }
  0x56   : > { %495 = vmatpush3.bf16.msra.mxu0 %v592_v3  ;;  %523 = vmatpush3.bf16.msra.mxu1 %v592_v3 }
  0x57   : > { %496 = vmatprep.subr.bf16.mxu0 %v593_v6  ;;  %516 = vmatprep.subr.bf16.mxu1 %v593_v6 }
  0x5a   : > { %497 = vmatpush3.bf16.msra.mxu0 %v593_v6  ;;  %524 = vmatpush3.bf16.msra.mxu1 %v593_v6 }
  0x5b   : > { %498 = vmatprep.subr.bf16.mxu0 %v594_v7  ;;  %517 = vmatprep.subr.bf16.mxu1 %v594_v7 }
  0x5e   : > { %499 = vmatpush3.bf16.msra.mxu0 %v594_v7  ;;  %525 = vmatpush3.bf16.msra.mxu1 %v594_v7 }
  0x5f   : > { %500 = vmatprep.subr.bf16.mxu0 %v595_v8  ;;  %518 = vmatprep.subr.bf16.mxu1 %v595_v8 }
  0x62   : > { %501 = vmatpush3.bf16.msra.mxu0 %v595_v8  ;;  %526 = vmatpush3.bf16.msra.mxu1 %v595_v8 }
  0x63   : > { %502 = vmatprep.subr.bf16.mxu0 %v596_v9  ;;  %519 = vmatprep.subr.bf16.mxu1 %v596_v9 }
  0x66   : > { %503 = vmatpush3.bf16.msra.mxu0 %v596_v9  ;;  %527 = vmatpush3.bf16.msra.mxu1 %v596_v9 }
  0x69   : > { %505 = vmatmul.mubr.bf16.vlgmr.msra.gmra.mxu0 %v599_v10  ;;  %509 = vmatmul.mubr.bf16.vlgmr.msra.gmra.mxu1 %v600_v11 }
 0x129   : > { %v506_v12 = vpop.f32.mrf.mxu0  ;;  %v510_v13 = vpop.f32.mrf.mxu1 }
 0x12a   : > { %343 = vst [vmem:[%s176_s17 + $0x10] sm:$0xff] %v506_v12  ;;  %347 = vst [vmem:[%s176_s17 + $0x30] sm:$0xff] %v510_v13 }
 0x12b   : > { %v310_v14 = vpop.f32.mrf.mxu0  ;;  %v326_v15 = vpop.f32.mrf.mxu1 }
 0x12c   : > { %341 = vst [vmem:[%s176_s17] sm:$0xff] %v310_v14  ;;  %345 = vst [vmem:[%s176_s17 + $0x20] sm:$0xff] %v326_v15 }
 0x12d   : > { %v507_v16 = vpop.f32.mrf.mxu0  ;;  %v511_v17 = vpop.f32.mrf.mxu1 }
 0x12e   : > { %344 = vst [vmem:[%s176_s17 + $0x18] sm:$0xff] %v507_v16  ;;  %348 = vst [vmem:[%s176_s17 + $0x38] sm:$0xff] %v511_v17 }
 0x12f   : > { %v313_v18 = vpop.f32.mrf.mxu0  ;;  %v329_v19 = vpop.f32.mrf.mxu1 }
 0x130   : > { %342 = vst [vmem:[%s176_s17 + $0x8] sm:$0xff] %v313_v18  ;;  %346 = vst [vmem:[%s176_s17 + $0x28] sm:$0xff] %v329_v19 }
 0x131   : > { %668 = shalt.err (!%p665_p0)
}
 0x132   : > { %s669_s3 = scalar_lea.hbm %s894_s19, 1024  ;;  %s673_s7 = scalar_lea.hbm %s939_s2, 2048 }
 0x133   : > { %p670_p5 = scmp.ne.s32.totalorder %s894_s19, %s669_s3  ;;  %p674_p4 = scmp.lt.s32.totalorder %s894_s19, %s939_s2 }
 0x134   : > { %p675_p6 = scmp.lt.s32.totalorder %s673_s7, %s669_s3 }
 0x135   : > { %p671_p2 = pnand %p670_p5, %p955_p11 }
 0x136   : > { %p676_p8 = por %p675_p6, %p674_p4 }
 0x137   : > { %p672_p1 = pneg %p671_p2 }
 0x139   : > { %p677_p3 = pnand %p676_p8, %p672_p1 }
 0x13b   : > { %680 = shalt.err (!%p677_p3)
}
 0x13c   : > { %s730_s24 = smov 128   ;;  %s731_s15 = smov 8  }
 0x13d   : > { %534 = dma.vmem_to_hbm [thread:$0]  (%p955_p11), %s889_s25, 1024, %s894_s19, %s350_s13, %s730_s24, %s730_s24, %s731_s15  }
 0x13e PF: > { %s378_s17 = sand.u32 1, %s711_s9   ;;  %p956_p7 = scmp.ne.s32.totalorder %s945_s16, 0 }
 0x13f   : > { %p957_p9 = scmp.ge.s32.totalorder %s723_s12, 2  ;;  %s379_s26 = scalar_lea.sflag [#allocation4], %s378_s17 }
 0x141   : > { %p545_p10 = pnand %p957_p9, %p956_p7 }
 0x143   : > { %p546_p12 = pneg %p545_p10 }
 0x145   : > { %706 = dma.done.wait (%p546_p12), %s379_s26, 1024  }
 0x146   : > { %708 = vsyncadd (%p546_p12), %s379_s26, 4294966272  ;;  %p16_p13 = scmp.ge.s32.totalorder %s801_s21, 4   ;;  %s958_s9 = smov %s715_s10 }
 0x147   : > { %s959_s10 = smov %s719_s11  ;;  %s960_s11 = smov %s821_s29 }
 0x148   : > { %s961_s12 = smov %s801_s21  ;;  %18 = sbr.rel (!%p16_p13) target bundleno = 6 (0x6), region = 77 }
 0x14d   :  { %384 = vsyncpa [#allocation3], 1 }
 0x14e   :  { %386 = vsyncpa [#allocation3 + $0x1], 1 }
 0x14f   :  { %387 = vsyncpa [#allocation6], 1 }
 0x150   :  { %388 = vsyncpa [#allocation4], 1 }
 0x151   :  { %390 = vsyncpa [#allocation4 + $0x1], 1 }

</bundles_post_ra>
